<compile_context>
chip_gen: v7x
topology: tpu7x:2x2x1
jax: 0.10.0
libtpu: 0.0.40
codegen_flags: <defaults>
</compile_context>

<pallas_src>
import jax
import jax.numpy as jnp
from jax.experimental import pallas as pl
from jax.experimental.pallas import tpu as pltpu


def attn_pool_kernel(x_ref, w1_ref, b1_ref, v_ref, pooled_ref):
    # x_ref     : [B, T, F]   block of B (n, c) slices
    # w1_ref    : [F, A]      fc1 weight (transposed)
    # b1_ref    : [1, A]      fc1 bias
    # v_ref     : [A, 1]      attention vector (transposed)
    # pooled_ref: [B, F]      attention-pooled rows (fc2 applied outside)
    B, T, F = x_ref.shape

    x = x_ref[...]                                      # [B, T, F]
    # Layout-free when T % 8 == 0 (rows of a slice sit in the sublanes of
    # the same (8, 128) tile in both views).
    x2 = x.reshape(B * T, F)                            # [B*T, F]

    # fc1 + tanh: one MXU matmul for the whole block (tanh -> EUP).
    h = jnp.tanh(
        jnp.dot(x2, w1_ref[...], preferred_element_type=jnp.float32)
        + b1_ref[...]
    )                                                   # [B*T, A]

    # attention energies
    e = jnp.dot(h, v_ref[...], preferred_element_type=jnp.float32)  # [B*T, 1]
    e = e.reshape(B, T, 1)                              # [B, T, 1]

    # per-slice softmax over T (numerically stable); keep weights
    # UNNORMALIZED and fold 1/sum into the pooled row (F multiplies per
    # slice instead of T*F).
    m = jnp.max(e, axis=1, keepdims=True)               # [B, 1, 1]
    p = jnp.exp(e - m)                                  # [B, T, 1]
    s = jnp.sum(p, axis=1)                              # [B, 1]

    # attention-weighted pooling over T (sublane reduce per slice)
    pooled = jnp.sum(x * p, axis=1)                     # [B, F] (f32)

    inv = pl.reciprocal(s, approx=True)                 # EUP vrcp (free slot)
    inv = inv * (2.0 - s * inv)                         # 1 Newton step -> ~f32 exact
    pooled_ref[...] = (pooled * inv).astype(pooled_ref.dtype)


def attention_forward(x, w1, b1, v, w2, *, block_rows=1024):
    """x: [N, T, F] or [N, C, T, F]; weights in PyTorch (out_features, in_features)."""
    if x.ndim == 3:
        x = x[:, None]                       # [N, 1, T, F]
    N, C, T, Fdim = x.shape
    A = w1.shape[0]
    O = w2.shape[0]
    nc = N * C

    xf = x.reshape(nc, T, Fdim)
    w1t = jnp.transpose(w1)                  # [F, A]
    b1r = b1.reshape(1, A)                   # [1, A]
    vt = jnp.transpose(v)                    # [A, 1]
    w2t = jnp.transpose(w2)                  # [F, O]

    # --- block sizing -------------------------------------------------------
    # block_rows=1024 keeps the (lane-padded) x block a few MiB: well inside
    # the 48 MiB scoped-VMEM budget below even on v7x (64 MiB physical).
    # On v5e/v6e (128 MiB VMEM, slower HBM) block_rows can be raised to
    # 2048-4096 for extra per-step amortization.
    b_blk = min(block_rows, nc)
    if nc > 8:
        # keep >= 2 grid steps so v7x's two TensorCores both get work
        b_blk = min(b_blk, pl.cdiv(nc, 2))
    if b_blk < nc:
        # leading dim of the 2-D output block must be a multiple of 8
        b_blk = max(8, (b_blk // 8) * 8)
    grid = (pl.cdiv(nc, b_blk),)

    pooled = pl.pallas_call(
        attn_pool_kernel,
        out_shape=jax.ShapeDtypeStruct((nc, Fdim), x.dtype),
        grid_spec=pltpu.PrefetchScalarGridSpec(
            num_scalar_prefetch=0,
            grid=grid,
            in_specs=[
                pl.BlockSpec((b_blk, T, Fdim), lambda i: (i, 0, 0)),  # x block
                pl.BlockSpec((Fdim, A), lambda i: (0, 0)),            # W1^T
                pl.BlockSpec((1, A), lambda i: (0, 0)),               # b1
                pl.BlockSpec((A, 1), lambda i: (0, 0)),               # v^T
            ],
            out_specs=pl.BlockSpec((b_blk, Fdim), lambda i: (i, 0)),  # pooled
        ),
        compiler_params=pltpu.CompilerParams(
            dimension_semantics=("parallel",),
            vmem_limit_bytes=48 * 1024 * 1024,
        ),
    )(xf, w1t, b1r, vt)

    # fc2 (no bias): tiny [N*C, F] @ [F, O] done in XLA so the kernel's
    # output stays lane-dense (review-preferred over a 3-wide masked store).
    out = jnp.dot(pooled, w2t, preferred_element_type=jnp.float32).astype(x.dtype)
    return out.reshape(N, C, O)


def attention_reference(x, w1, b1, v, w2):
    """Pure-JAX reference mirroring the PyTorch forward."""
    if x.ndim == 3:
        x = x[:, None]
    h = jnp.tanh(jnp.einsum('nctf,af->ncta', x, w1) + b1)
    e = jnp.einsum('ncta,oa->ncto', h, v)            # [N,C,T,1]
    alpha = jax.nn.softmax(e, axis=2)
    pooled = jnp.sum(x * alpha, axis=2)              # [N,C,F]
    return jnp.einsum('ncf,of->nco', pooled, w2)


if __name__ == "__main__":
    # Small shapes consistent with the module: F=input_size, A=att_feature,
    # O=output_size.  NOTE: activations kept f32 (bf16-on-v6e/v7x is a
    # production-dtype decision, not applicable to this f32 test).
    T, F_in, A, O = 8, 32, 16, 3

    key = jax.random.PRNGKey(0)
    kx, k1, kb, kv, k2, kx4 = jax.random.split(key, 6)

    w1 = jax.random.normal(k1, (A, F_in), dtype=jnp.float32) * 0.1   # fc1.weight
    b1 = jax.random.normal(kb, (A,), dtype=jnp.float32) * 0.1        # fc1.bias
    v = jax.random.normal(kv, (1, A), dtype=jnp.float32) * 0.1       # v.weight
    w2 = jax.random.normal(k2, (O, F_in), dtype=jnp.float32) * 0.1   # fc2.weight

    # Case 1: 3-D input [N, T, F]; small block_rows forces multiple grid
    # steps including a partial trailing block.
    N = 20
    x3d = jax.random.normal(kx, (N, T, F_in), dtype=jnp.float32)
    out3 = jax.block_until_ready(
        attention_forward(x3d, w1, b1, v, w2, block_rows=16))
    ref3 = attention_reference(x3d, w1, b1, v, w2)
    assert out3.shape == (N, 1, O), out3.shape
    assert jnp.allclose(out3, ref3, atol=1e-4, rtol=1e-4), (
        f"max err {jnp.max(jnp.abs(out3 - ref3))}")

    # Case 2: 4-D input [N, C, T, F]; single full-array block.
    x4d = jax.random.normal(kx4, (2, 4, T, F_in), dtype=jnp.float32)
    out4 = jax.block_until_ready(attention_forward(x4d, w1, b1, v, w2))
    ref4 = attention_reference(x4d, w1, b1, v, w2)
    assert out4.shape == (2, 4, O), out4.shape
    assert jnp.allclose(out4, ref4, atol=1e-4, rtol=1e-4), (
        f"max err {jnp.max(jnp.abs(out4 - ref4))}")

    print("KERNEL_OK")
</pallas_src>

<mosaic_0001>
module attributes {stable_mosaic.version = 11 : i64} {
  func.func @attn_pool_kernel(%arg0: i32, %arg1: memref<8x8x32xf32, #tpu.memory_space<vmem>>, %arg2: memref<32x16xf32, #tpu.memory_space<vmem>>, %arg3: memref<1x16xf32, #tpu.memory_space<vmem>>, %arg4: memref<16x1xf32, #tpu.memory_space<vmem>>, %arg5: memref<8x32xf32, #tpu.memory_space<vmem>>) attributes {dimension_semantics = [#tpu.dimension_semantics<parallel>], iteration_bounds = array<i64: 3>, scalar_prefetch = 0 : i64, scratch_operands = 0 : i64, tpu.core_type = #tpu.core_type<tc>, window_params = [{transform_indices = @transform_0, window_bounds = array<i64: 8, 8, 32>}, {pipeline_mode = #tpu.pipeline_mode<synchronous>, transform_indices = @transform_1, window_bounds = array<i64: 32, 16>}, {pipeline_mode = #tpu.pipeline_mode<synchronous>, transform_indices = @transform_2, window_bounds = array<i64: 1, 16>}, {pipeline_mode = #tpu.pipeline_mode<synchronous>, transform_indices = @transform_3, window_bounds = array<i64: 16, 1>}, {transform_indices = @transform_4, window_bounds = array<i64: 8, 32>}]} {
    %c0 = arith.constant 0 : index
    %c0_0 = arith.constant 0 : index
    %c0_1 = arith.constant 0 : index
    %0 = vector.load %arg1[%c0, %c0_0, %c0_1] : memref<8x8x32xf32, #tpu.memory_space<vmem>>, vector<8x8x32xf32>
    %1 = vector.shape_cast %0 : vector<8x8x32xf32> to vector<64x32xf32>
    %c0_2 = arith.constant 0 : index
    %c0_3 = arith.constant 0 : index
    %2 = vector.load %arg2[%c0_2, %c0_3] : memref<32x16xf32, #tpu.memory_space<vmem>>, vector<32x16xf32>
    %cst = arith.constant dense<0.000000e+00> : vector<64x16xf32>
    %3 = tpu.matmul %1, %2, %cst {dimension_numbers = #tpu.dot_dimension_numbers<[1], [0], [0], [1], [0, 0, 1, 1], [], []>} : vector<64x32xf32>, vector<32x16xf32>, vector<64x16xf32> -> vector<64x16xf32>
    %c0_4 = arith.constant 0 : index
    %c0_5 = arith.constant 0 : index
    %4 = vector.load %arg3[%c0_4, %c0_5] : memref<1x16xf32, #tpu.memory_space<vmem>>, vector<1x16xf32>
    %5 = vector.broadcast %4 : vector<1x16xf32> to vector<64x16xf32>
    %6 = arith.addf %3, %5 : vector<64x16xf32>
    %7 = math.tanh %6 : vector<64x16xf32>
    %c0_6 = arith.constant 0 : index
    %c0_7 = arith.constant 0 : index
    %8 = vector.load %arg4[%c0_6, %c0_7] : memref<16x1xf32, #tpu.memory_space<vmem>>, vector<16x1xf32>
    %cst_8 = arith.constant dense<0.000000e+00> : vector<64x1xf32>
    %9 = tpu.matmul %7, %8, %cst_8 {dimension_numbers = #tpu.dot_dimension_numbers<[1], [0], [0], [1], [0, 0, 1, 1], [], []>} : vector<64x16xf32>, vector<16x1xf32>, vector<64x1xf32> -> vector<64x1xf32>
    %10 = vector.shape_cast %9 : vector<64x1xf32> to vector<8x8x1xf32>
    %cst_9 = arith.constant dense<0xFF800000> : vector<8x1xf32>
    %11 = vector.multi_reduction <maximumf>, %10, %cst_9 [1] : vector<8x8x1xf32> to vector<8x1xf32>
    %12 = vector.shape_cast %11 : vector<8x1xf32> to vector<8x1x1xf32>
    %13 = vector.broadcast %12 : vector<8x1x1xf32> to vector<8x8x1xf32>
    %14 = arith.subf %10, %13 : vector<8x8x1xf32>
    %15 = math.exp %14 : vector<8x8x1xf32>
    %cst_10 = arith.constant dense<0.000000e+00> : vector<8x1xf32>
    %16 = vector.multi_reduction <add>, %15, %cst_10 [1] : vector<8x8x1xf32> to vector<8x1xf32>
    %17 = vector.broadcast %15 : vector<8x8x1xf32> to vector<8x8x32xf32>
    %18 = arith.mulf %0, %17 : vector<8x8x32xf32>
    %cst_11 = arith.constant dense<0.000000e+00> : vector<8x32xf32>
    %19 = vector.multi_reduction <add>, %18, %cst_11 [1] : vector<8x8x32xf32> to vector<8x32xf32>
    %20 = tpu.reciprocal %16 {approx = true} : vector<8x1xf32> -> vector<8x1xf32>
    %21 = arith.mulf %16, %20 : vector<8x1xf32>
    %cst_12 = arith.constant 2.000000e+00 : f32
    %22 = vector.broadcast %cst_12 : f32 to vector<8x1xf32>
    %23 = arith.subf %22, %21 : vector<8x1xf32>
    %24 = arith.mulf %20, %23 : vector<8x1xf32>
    %25 = vector.broadcast %24 : vector<8x1xf32> to vector<8x32xf32>
    %26 = arith.mulf %19, %25 : vector<8x32xf32>
    %c0_13 = arith.constant 0 : index
    %c0_14 = arith.constant 0 : index
    %27 = vector.load %arg5[%c0_13, %c0_14] : memref<8x32xf32, #tpu.memory_space<vmem>>, vector<8x32xf32>
    tpu.vector_store %arg5[%c0_13, %c0_14], %26 {strides = array<i32>} : memref<8x32xf32, #tpu.memory_space<vmem>>, vector<8x32xf32>,
    return
  }
  func.func @transform_0(%arg0: i32) -> (i32, i32, i32) {
    %c0_i32 = arith.constant 0 : i32
    %c0_i32_0 = arith.constant 0 : i32
    %c0_i32_1 = arith.constant 0 : i32
    return %arg0, %c0_i32, %c0_i32_0 : i32, i32, i32
  }
  func.func @transform_1(%arg0: i32) -> (i32, i32) {
    %c0_i32 = arith.constant 0 : i32
    %c0_i32_0 = arith.constant 0 : i32
    %c0_i32_1 = arith.constant 0 : i32
    return %c0_i32, %c0_i32_0 : i32, i32
  }
  func.func @transform_2(%arg0: i32) -> (i32, i32) {
    %c0_i32 = arith.constant 0 : i32
    %c0_i32_0 = arith.constant 0 : i32
    %c0_i32_1 = arith.constant 0 : i32
    return %c0_i32, %c0_i32_0 : i32, i32
  }
  func.func @transform_3(%arg0: i32) -> (i32, i32) {
    %c0_i32 = arith.constant 0 : i32
    %c0_i32_0 = arith.constant 0 : i32
    %c0_i32_1 = arith.constant 0 : i32
    return %c0_i32, %c0_i32_0 : i32, i32
  }
  func.func @transform_4(%arg0: i32) -> (i32, i32) {
    %c0_i32 = arith.constant 0 : i32
    %c0_i32_0 = arith.constant 0 : i32
    return %arg0, %c0_i32 : i32, i32
  }
}

</mosaic_0001>

<bundles_post_ra>
// kernel: tpu_custom_call.1
= control target key start
LH: loop header
LB: loop body
LE: loop exit
PB: predicated region body
PF: predicated region fallthrough
CT: control target
= control target key end

     0   :  { %9 = vsyncpa [#allocation3], 0  ;;  %s1517_s0 = inlined_call_operand.hbm [shape: f32[20,8,32], index: 0, kind: input, shape index: {}]   ;;  %s1518_s1 = inlined_call_operand.vmem [shape: f32[32,16], index: 1, kind: input, shape index: {}]   ;;  %s1519_s2 = inlined_call_operand.vmem [shape: f32[1,16], index: 2, kind: input, shape index: {}]   ;;  %s1520_s3 = inlined_call_operand.vmem [shape: f32[16,1], index: 3, kind: input, shape index: {}]   ;;  %s1521_s4 = inlined_call_operand.hbm [shape: f32[20,32], index: 4, kind: output, shape index: {}]  }
   0x1   :  { %11 = vsyncpa [#allocation3 + $0x1], 0 }
   0x2   :  { %12 = vsyncpa [#allocation4], 0 }
   0x3   :  { %14 = vsyncpa [#allocation4 + $0x1], 0  ;;  %s1269_s15 = smov 0   ;;  %s1271_s16 = smov 0  }
   0x4   :  { %s1273_s17 = smov 0   ;;  %s1275_s18 = smov 0  }
   0x5 LB: > { %s1290_s19 = sadd.s32 4294967295, %s1237_s18   ;;  %s945_s20 = sadd.s32 4294967294, %s1237_s18   ;;  %s1237_s18 = sphi %s1275_s18, %s1529_s18   ;;  %s1233_s17 = sphi %s1273_s17, %s1528_s17   ;;  %s1229_s16 = sphi %s1271_s16, %s1527_s16   ;;  %s1225_s15 = sphi %s1269_s15, %s1526_s15  }
   0x6   : > { %s1294_s21 = sadd.s32 1, %s1237_s18   ;;  %s27_s22 = sadd.s32 1, %s1233_s17 }
   0x7   : > { %s24_s23 = ssub.s32 %s1237_s18, %s1294_s21  ;;  %p34_p0 = scmp.ne.s32.totalorder %s1233_s17, %s1229_s16 }
   0x8   : > { %p25_p1 = scmp.eq.s32.totalorder %s24_s23, 0  ;;  %p35_p2 = scmp.eq.s32.totalorder %s1237_s18, 0 }
   0x9   : > { %p40_p3 = scmp.ne.s32.totalorder %s1229_s16, %s1225_s15  ;;  %p41_p4 = scmp.eq.s32.totalorder %s1290_s19, 0 }
   0xa   : > { %s1306_s24 = scalar_select %p25_p1, %s1233_s17, %s27_s22  }
   0xb   : > { %p36_p5 = por %p35_p2, %p34_p0  ;;  %p1308_p6 = por %p41_p4, %p40_p3 }
   0xc   : > { %p127_p7 = scmp.eq.s32.totalorder %s1290_s19, 2  ;;  %p133_p8 = scmp.eq.s32.totalorder %s945_s20, 2 }
   0xd   : > { %p947_p11 = scmp.ge.s32.totalorder %s1237_s18, 3 }
   0xe   : > { %p1313_p9 = por %p127_p7, %p34_p0  ;;  %p1317_p10 = por %p133_p8, %p40_p3 }
   0xf   : > { %158 = sbr.rel (%p947_p11) target bundleno = 57 (0x39), region = 28 }
  0x10   : > { %s1524_s27 = scalar_select %p1317_p10, 1, 0 }
  0x16   : > { %161 = sbr.rel (!%p36_p5) target bundleno = 57 (0x39), region = 32  ;;  %s162_s28 = sand.u32 (%p36_p5), 1, %s1233_s17  }
  0x17   : > { %s949_s29 = sshll.u32 (%p36_p5), %s1237_s18, 3  ;;  %s948_s30 = sshll.u32 (%p36_p5), %s162_s28, 6 }
  0x18   : > { %s168_s5 = ssub.s32 (%p36_p5), 20, %s949_s29  ;;  %s1327_s8 = scalar_lea.sflag (%p36_p5), [#allocation3], %s162_s28 }
  0x19   : > { %p169_p12 = scmp.lt.s32.totalorder (%p36_p5), %s168_s5, 8  ;;  %s166_s9 = scalar_lea.vmem (%p36_p5), [#allocation2], %s948_s30 }
  0x1d   : > { %s1531_s5 = smov (!%p169_p12, %s168_s5), 8 }
  0x1e   : > { %s1324_s6 = sshll.u32 %s1531_s5, 7 }
  0x1f   : > { %s173_s7 = ssub.s32 1024, %s1324_s6 }
  0x20   : > { %174 = vsyncadd %s1327_s8, %s173_s7  ;;  %p951_p13 = scmp.ne.s32.totalorder %s1324_s6, 0  ;;  %s979_s10 = sshll.u32 %s1237_s18, 10 }
  0x21   : > { %s1335_s13 = scalar_lea.hbm %s1517_s0, %s979_s10  ;;  %s179_s14 = sshll.u32 %s166_s9, 4  ;;  %s1337_s14 = int_to_ptr.vmem [resolvable:$true] %s179_s14 }
  0x22   : > { %s1143_s20 = scalar_lea.hbm %s1335_s13, %s1324_s6  ;;  %s1147_s28 = scalar_lea.hbm %s1517_s0, 2560 }
  0x23   : > { %p1144_p0 = scmp.ne.s32.totalorder %s1335_s13, %s1143_s20  ;;  %p1148_p3 = scmp.lt.u32.totalorder %s1335_s13, %s1517_s0 }
  0x24   : > { %p1149_p4 = scmp.lt.u32.totalorder %s1147_s28, %s1143_s20  ;;  %p1151_p7 = scmp.lt.u32.totalorder %s1143_s20, %s1335_s13 }
  0x25   : > { %p1145_p1 = pnand %p1144_p0, %p951_p13 }
  0x26   : > { %p1150_p5 = por %p1149_p4, %p1148_p3 }
  0x27   : > { %p1146_p2 = pneg %p1145_p1 }
  0x28   : > { %p1152_p8 = por %p1151_p7, %p1150_p5 }
  0x2a   : > { %p1153_p11 = pnand %p1152_p8, %p1146_p2 }
  0x2c   : > { %1156 = shalt.err (!%p1153_p11)
}
  0x2d   : > { %s1157_s5 = scalar_lea.vmem %s1337_s14, %s1324_s6  ;;  %s1239_s7 = smov [#allocation2]  }
  0x2e   : > { %p1158_p12 = scmp.ne.s32.totalorder %s1337_s14, %s1157_s5  ;;  %s1161_s9 = sshll.u32 %s1239_s7, 4  ;;  %s1162_s9 = int_to_ptr.vmem [resolvable:$false] %s1161_s9 }
  0x2f   : > { %s1163_s10 = scalar_lea.vmem %s1162_s9, 2048  ;;  %p1164_p10 = scmp.lt.s32.totalorder %s1337_s14, %s1162_s9 }
  0x30   : > { %p1159_p0 = pnand %p1158_p12, %p951_p13  ;;  %p1165_p3 = scmp.lt.s32.totalorder %s1163_s10, %s1157_s5 }
  0x32   : > { %p1160_p1 = pneg %p1159_p0  ;;  %p1166_p4 = por %p1165_p3, %p1164_p10 }
  0x34   : > { %p1167_p5 = pnand %p1166_p4, %p1160_p1 }
  0x36   : > { %1170 = shalt.err (!%p1167_p5)
}
  0x37   : > { %s1240_s11 = smov 128   ;;  %s1241_s12 = smov 8  }
  0x38   : > { %185 = dma.hbm_to_vmem [thread:$0]  (%p951_p13), %s1335_s13, %s1324_s6, %s1337_s14, %s1327_s8, %s1240_s11, %s1240_s11, %s1241_s12  }
  0x39 PF: > { %p955_p2 = scmp.ge.s32.totalorder %s1237_s18, 1  ;;  %p187_p7 = scmp.lt.s32.totalorder %s1237_s18, 4 }
  0x3b   : > { %p188_p8 = pnand %p955_p2, %p187_p7 }
  0x3c   : > { %s1367_s20 = sand.u32 (!%p188_p8), 1, %s1229_s16  }
  0x3d   : > { %191 = sbr.rel (%p188_p8) target bundleno = 738 (0x2e2), region = 36  ;;  %s956_s22 = sshll.u32 (!%p188_p8), %s1367_s20, 6 }
  0x3e   : > { %s194_s23 = scalar_lea.sflag (!%p188_p8), [#allocation3], %s1367_s20  ;;  %s197_s28 = scalar_lea.vmem (!%p188_p8), [#allocation2], %s956_s22 }
  0x44   : > { %1216 = dma.done.wait (%p1308_p6), %s194_s23, 1024  }
  0x45   : > { %1218 = vsyncadd (%p1308_p6), %s194_s23, 4294966272  ;;  %vm246_vm0 = vcmask 261120   ;;  %v235_v0 = vld [vmem:[%s1518_s1] sm:$0xff]  ;;  %v236_v1 = vld [vmem:[%s1518_s1 + $0x8] sm:$0xff]  ;;  %vm386_vm1 = vcmask 130048   ;;  %v1242_v42 = vmov 0  }
  0x46   : > { %v237_v2 = vld [vmem:[%s1518_s1 + $0x10] sm:$0xff]  ;;  %v1038_v3 = vpack.c.bf16 %v236_v1, %v235_v0  ;;  %v238_v4 = vld [vmem:[%s1518_s1 + $0x18] sm:$0xff]  ;;  %v1387_v5 = vld [vmem:[%s197_s28] sm:$0xff]  ;;  %1093 = vset.pattern.permute.xlu0 %v1242_v42  ;;  %1094 = vset.pattern.permute.xlu1 %v1242_v42  ;;  %vm516_vm2 = vcmask 7168   ;;  %vm845_vm3 = vcmask 1041409   ;;  %vm847_vm4 = vcmask 1042434  }
  0x47   : > { %v1042_v6 = vpack.c.bf16 %v238_v4, %v237_v2  ;;  %1010 = vmatprep.mubr.msk.f32.mxu0 %vm246_vm0, %v1387_v5  ;;  %v1391_v7 = vld [vmem:[%s197_s28 + $0x8] sm:$0xff]  ;;  %v1393_v8 = vld [vmem:[%s197_s28 + $0x10] sm:$0xff]  ;;  %v1399_v9 = vld [vmem:[%s197_s28 + $0x18] sm:$0xff]  ;;  %s957_s23 = sshll.u32 %s1367_s20, 3  ;;  %vm849_vm5 = vcmask 1043459   ;;  %vm851_vm6 = vcmask 1044484  }
  0x48   : > { %1039 = vmatprep.subr.bf16.mxu0 %v1038_v3  ;;  %v1401_v10 = vld [vmem:[%s197_s28 + $0x20] sm:$0xff]  ;;  %v1407_v11 = vld [vmem:[%s197_s28 + $0x28] sm:$0xff]  ;;  %v1409_v12 = vld [vmem:[%s197_s28 + $0x30] sm:$0xff]  ;;  %vm853_vm7 = vcmask 1045509   ;;  %vm855_vm8 = vcmask 1046534   ;;  %s221_s6 = scalar_lea.vmem [#allocation5], %s957_s23 }
  0x49   : > { %1041 = vmatpush3.bf16.msra.mxu0 %v1038_v3  ;;  %v1415_v13 = vld [vmem:[%s197_s28 + $0x38] sm:$0xff]  ;;  %v384_v14 = vld [vmem:[%s1520_s3] sm:$0xff]  ;;  %v385_v15 = vld [vmem:[%s1520_s3 + $0x8] sm:$0xff]  ;;  %s976_s28 = sshll.u32 %s1290_s19, 7  ;;  %s875_s8 = sshll.u32 %s221_s6, 4  ;;  %vm857_vm9 = vcmask 1047559   ;;  %s1475_s8 = int_to_ptr.vmem [resolvable:$true] %s875_s8 }
  0x4a   : > { %1043 = vmatprep.subr.bf16.mxu0 %v1042_v6  ;;  %v1046_v16 = vpack.c.bf16 %v385_v15, %v384_v14  ;;  %v958_v17 = vld [vmem:[%s1519_s2] ss:$0 sm:$0xff]  ;;  %s1473_s29 = scalar_lea.hbm %s1521_s4, %s976_s28  ;;  %s862_s19 = scalar_lea.sflag [#allocation4], %s1367_s20 }
  0x4b   : > { %s1171_s30 = scalar_lea.vmem %s1475_s8, 128  ;;  %s1243_s5 = smov [#allocation5]  }
  0x4c   : > { %1047 = vmatprep.subr.bf16.mxu1 %v1046_v16  ;;  %p1172_p6 = scmp.ne.s32.totalorder %s1475_s8, %s1171_s30  ;;  %s1175_s7 = sshll.u32 %s1243_s5, 4  ;;  %s1176_s7 = int_to_ptr.vmem [resolvable:$false] %s1175_s7 }
  0x4d   : > { %1045 = vmatpush3.bf16.msra.mxu0 %v1042_v6  ;;  %1049 = vmatpush3.bf16.msra.mxu1 %v1046_v16  ;;  %s1177_s25 = scalar_lea.vmem %s1176_s7, 256  ;;  %p1178_p11 = scmp.lt.s32.totalorder %s1475_s8, %s1176_s7 }
  0x4e   : > { %p1173_p10 = pnand %p1172_p6, %p1313_p9  ;;  %p1179_p12 = scmp.lt.s32.totalorder %s1177_s25, %s1171_s30 }
  0x50   : > { %1011 = vmatmul.mubr.msk.f32.vlgmr.msra.gmra.mrb[0].mxu0 %vm246_vm0, %v1391_v7  ;;  %p1174_p13 = pneg %p1173_p10  ;;  %p1180_p0 = por %p1179_p12, %p1178_p11 }
  0x51   : > { %1013 = vmatprep.mubr.msk.f32.mxu0 %vm246_vm0, %v1393_v8 }
  0x52   : > { %p1181_p1 = pnand %p1180_p0, %p1174_p13 }
  0x54   : > { %1014 = vmatmul.mubr.msk.f32.gmra.mrb[2].mxu0 %vm246_vm0, %v1399_v9 }
  0x55   : > { %1016 = vmatprep.mubr.msk.f32.mxu0 %vm246_vm0, %v1401_v10 }
  0x58   : > { %1017 = vmatmul.mubr.msk.f32.gmra.mrb[4].mxu0 %vm246_vm0, %v1407_v11 }
  0x59   : > { %1019 = vmatprep.mubr.msk.f32.mxu0 %vm246_vm0, %v1409_v12 }
  0x5c   : > { %1020 = vmatmul.mubr.msk.f32.gmra.mrb[6].mxu0 %vm246_vm0, %v1415_v13 }
 0x123   : > { %v1012_v18 = vpop.f32.mrb[0].mxu0 }
 0x124   : > { %v343_v19 = vadd.f32 %v1012_v18, %v958_v17  ;;  %v337_v20 = vpop.f32.mrb[1].mxu0 }
 0x125   : > { %v338_v21 = vadd.f32 %v958_v17, %v337_v20 }
 0x127   : > { %1095 = vtanh.f32 %v338_v21  ;;  %v1015_v22 = vpop.f32.mrb[2].mxu0 }
 0x128   : > { %1097 = vtanh.f32 %v343_v19  ;;  %v353_v23 = vadd.f32 %v1015_v22, %v958_v17  ;;  %v347_v24 = vpop.f32.mrb[3].mxu0 }
 0x129   : > { %v348_v25 = vadd.f32 %v958_v17, %v347_v24 }
 0x12b   : > { %1099 = vtanh.f32 %v348_v25  ;;  %v1018_v26 = vpop.f32.mrb[4].mxu0 }
 0x12c   : > { %1101 = vtanh.f32 %v353_v23  ;;  %v363_v27 = vadd.f32 %v1018_v26, %v958_v17  ;;  %v357_v28 = vpop.f32.mrb[5].mxu0 }
 0x12d   : > { %v358_v29 = vadd.f32 %v958_v17, %v357_v28 }
 0x12f   : > { %1103 = vtanh.f32 %v358_v29  ;;  %v1021_v30 = vpop.f32.mrb[6].mxu0 }
 0x130   : > { %1105 = vtanh.f32 %v363_v27  ;;  %v373_v31 = vadd.f32 %v1021_v30, %v958_v17  ;;  %v367_v32 = vpop.f32.mrb[7].mxu0 }
 0x131   : > { %v1096_v33 = vpop.eup %1095  ;;  %v368_v34 = vadd.f32 %v958_v17, %v367_v32 }
 0x132   : > { %v1098_v35 = vpop.eup %1097  ;;  %1026 = vmatprep.mubr.msk.f32.mxu1 %vm386_vm1, %v1096_v33 }
 0x133   : > { %1107 = vtanh.f32 %v368_v34  ;;  %1027 = vmatmul.mubr.msk.f32.vlgmr.msra.gmra.mrb[0].mxu1 %vm386_vm1, %v1098_v35 }
 0x134   : > { %1109 = vtanh.f32 %v373_v31 }
 0x135   : > { %v1100_v36 = vpop.eup %1099 }
 0x136   : > { %v1102_v37 = vpop.eup %1101  ;;  %1029 = vmatprep.mubr.msk.f32.mxu1 %vm386_vm1, %v1100_v36 }
 0x137   : > { %1030 = vmatmul.mubr.msk.f32.gmra.mrb[2].mxu1 %vm386_vm1, %v1102_v37 }
 0x139   : > { %v1104_v38 = vpop.eup %1103 }
 0x13a   : > { %v1106_v39 = vpop.eup %1105  ;;  %1032 = vmatprep.mubr.msk.f32.mxu1 %vm386_vm1, %v1104_v38 }
 0x13b   : > { %1033 = vmatmul.mubr.msk.f32.gmra.mrb[4].mxu1 %vm386_vm1, %v1106_v39 }
 0x13d   : > { %v1108_v40 = vpop.eup %1107 }
 0x13e   : > { %v1110_v41 = vpop.eup %1109  ;;  %1035 = vmatprep.mubr.msk.f32.mxu1 %vm386_vm1, %v1108_v40 }
 0x13f   : > { %1036 = vmatmul.mubr.msk.f32.gmra.mrb[6].mxu1 %vm386_vm1, %v1110_v41 }
 0x206   : > { %v1028_v43 = vpop.f32.mrb[0].mxu1 }
 0x207   : > { %v524_v44 = vsel %vm516_vm2, %v1028_v43, -inf  ;;  %v477_v45 = vpop.f32.mrb[1].mxu1 }
 0x208   : > { %v525_v46 = vrot.slane %v524_v44, 4  ;;  %v517_v47 = vsel %vm516_vm2, %v477_v45, -inf }
 0x209   : > { %v518_v48 = vrot.slane %v517_v47, 4 }
 0x20a   : > { %v526_v49 = vmax.f32 %v524_v44, %v525_v46  ;;  %v1031_v50 = vpop.f32.mrb[2].mxu1 }
 0x20b   : > { %v519_v51 = vmax.f32 %v517_v47, %v518_v48  ;;  %v538_v52 = vsel %vm516_vm2, %v1031_v50, -inf  ;;  %v487_v53 = vpop.f32.mrb[3].mxu1 }
 0x20c   : > { %v527_v54 = vrot.slane %v526_v49, 2  ;;  %v539_v55 = vrot.slane %v538_v52, 4  ;;  %v531_v56 = vsel %vm516_vm2, %v487_v53, -inf }
 0x20d   : > { %v520_v57 = vrot.slane %v519_v51, 2  ;;  %v532_v58 = vrot.slane %v531_v56, 4 }
 0x20e   : > { %v528_v59 = vmax.f32 %v526_v49, %v527_v54  ;;  %v540_v60 = vmax.f32 %v538_v52, %v539_v55  ;;  %v1034_v61 = vpop.f32.mrb[4].mxu1 }
 0x20f   : > { %v521_v62 = vmax.f32 %v519_v51, %v520_v57  ;;  %v533_v63 = vmax.f32 %v531_v56, %v532_v58  ;;  %v552_v0 = vsel %vm516_vm2, %v1034_v61, -inf  ;;  %v497_v1 = vpop.f32.mrb[5].mxu1 }
 0x210   : > { %v529_v2 = vrot.slane %v528_v59, 1  ;;  %v541_v3 = vrot.slane %v540_v60, 2  ;;  %v553_v4 = vrot.slane %v552_v0, 4  ;;  %v545_v6 = vsel %vm516_vm2, %v497_v1, -inf }
 0x211   : > { %v522_v14 = vrot.slane %v521_v62, 1  ;;  %v534_v15 = vrot.slane %v533_v63, 2  ;;  %v546_v16 = vrot.slane %v545_v6, 4 }
 0x212   : > { %v530_v17 = vmax.f32 %v528_v59, %v529_v2  ;;  %v542_v18 = vmax.f32 %v540_v60, %v541_v3  ;;  %v554_v19 = vmax.f32 %v552_v0, %v553_v4  ;;  %v1037_v20 = vpop.f32.mrb[6].mxu1 }
 0x213   : > { %v523_v21 = vmax.f32 %v521_v62, %v522_v14  ;;  %v535_v22 = vmax.f32 %v533_v63, %v534_v15  ;;  %v547_v23 = vmax.f32 %v545_v6, %v546_v16  ;;  %v566_v24 = vsel %vm516_vm2, %v1037_v20, -inf  ;;  %v507_v25 = vpop.f32.mrb[7].mxu1 }
 0x214   : > { %v574_v26 = vsub.f32 %v1028_v43, %v530_v17  ;;  %v543_v27 = vrot.slane %v542_v18, 1  ;;  %v555_v28 = vrot.slane %v554_v19, 2  ;;  %v567_v29 = vrot.slane %v566_v24, 4 }
 0x215   : > { %v573_v30 = vsub.f32 %v477_v45, %v523_v21  ;;  %v536_v31 = vrot.slane %v535_v22, 1  ;;  %v548_v32 = vrot.slane %v547_v23, 2  ;;  %v559_v33 = vsel %vm516_vm2, %v507_v25, -inf }
 0x216   : > { %v583_v34 = vmul.f32 1.442695, %v574_v26  ;;  %v544_v35 = vmax.f32 %v542_v18, %v543_v27  ;;  %v556_v36 = vmax.f32 %v554_v19, %v555_v28  ;;  %v568_v37 = vmax.f32 %v566_v24, %v567_v29 }
 0x217   : > { %v581_v38 = vmul.f32 1.442695, %v573_v30  ;;  %v537_v39 = vmax.f32 %v535_v22, %v536_v31  ;;  %v549_v40 = vmax.f32 %v547_v23, %v548_v32  ;;  %v560_v41 = vrot.slane %v559_v33, 4 }
 0x218   : > { %1111 = vpow2.f32 %v583_v34  ;;  %v576_v42 = vsub.f32 %v1031_v50, %v544_v35  ;;  %v557_v44 = vrot.slane %v556_v36, 1  ;;  %v569_v43 = vrot.slane %v568_v37, 2 }
 0x219   : > { %1113 = vpow2.f32 %v581_v38  ;;  %v575_v46 = vsub.f32 %v487_v53, %v537_v39  ;;  %v550_v47 = vrot.slane %v549_v40, 1  ;;  %v561_v45 = vmax.f32 %v559_v33, %v560_v41 }
 0x21a   : > { %v587_v48 = vmul.f32 1.442695, %v576_v42  ;;  %v558_v49 = vmax.f32 %v556_v36, %v557_v44  ;;  %v570_v51 = vmax.f32 %v568_v37, %v569_v43 }
 0x21b   : > { %v585_v52 = vmul.f32 1.442695, %v575_v46  ;;  %v551_v54 = vmax.f32 %v549_v40, %v550_v47  ;;  %v562_v55 = vrot.slane %v561_v45, 2 }
 0x21c   : > { %1115 = vpow2.f32 %v587_v48  ;;  %v578_v56 = vsub.f32 %v1034_v61, %v558_v49  ;;  %v571_v57 = vrot.slane %v570_v51, 1 }
 0x21d   : > { %1117 = vpow2.f32 %v585_v52  ;;  %v577_v58 = vsub.f32 %v497_v1, %v551_v54  ;;  %v563_v59 = vmax.f32 %v561_v45, %v562_v55 }
 0x21e   : > { %v591_v60 = vmul.f32 1.442695, %v578_v56  ;;  %v572_v50 = vmax.f32 %v570_v51, %v571_v57 }
 0x21f   : > { %v589_v62 = vmul.f32 1.442695, %v577_v58  ;;  %v564_v63 = vrot.slane %v563_v59, 1 }
 0x220   : > { %1119 = vpow2.f32 %v591_v60  ;;  %v580_v53 = vsub.f32 %v1037_v20, %v572_v50 }
 0x221   : > { %1121 = vpow2.f32 %v589_v62  ;;  %v565_v0 = vmax.f32 %v563_v59, %v564_v63 }
 0x222   : > { %v1112_v2 = vpop.eup %1111  ;;  %v595_v3 = vmul.f32 1.442695, %v580_v53 }
 0x223   : > { %v1114_v4 = vpop.eup %1113  ;;  %v579_v6 = vsub.f32 %v507_v25, %v565_v0  ;;  %660 = vperm.xlu0 %1093, %v1112_v2   ;;  %v604_v14 = vsel %vm516_vm2, %v1112_v2, 0.0 }
 0x224   : > { %1123 = vpow2.f32 %v595_v3  ;;  %v605_v61 = vrot.slane %v604_v14, 4  ;;  %v597_v1 = vsel %vm516_vm2, %v1114_v4, 0.0 }
 0x225   : > { %v593_v15 = vmul.f32 1.442695, %v579_v6  ;;  %v598_v16 = vrot.slane %v597_v1, 4 }
 0x226   : > { %v1116_v17 = vpop.eup %1115  ;;  %v606_v18 = vadd.f32 %v605_v61, %v604_v14 }
 0x227   : > { %v1118_v19 = vpop.eup %1117  ;;  %1125 = vpow2.f32 %v593_v15  ;;  %655 = vperm.xlu0 %1093, %v1114_v4   ;;  %670 = vperm.xlu1 %1094, %v1116_v17   ;;  %v599_v20 = vadd.f32 %v598_v16, %v597_v1  ;;  %v618_v21 = vsel %vm516_vm2, %v1116_v17, 0.0 }
 0x228   : > { %v607_v22 = vrot.slane %v606_v18, 2  ;;  %v619_v23 = vrot.slane %v618_v21, 4  ;;  %v611_v24 = vsel %vm516_vm2, %v1118_v19, 0.0 }
 0x229   : > { %v600_v25 = vrot.slane %v599_v20, 2  ;;  %v612_v26 = vrot.slane %v611_v24, 4 }
 0x22a   : > { %v1120_v27 = vpop.eup %1119  ;;  %v608_v28 = vadd.f32 %v607_v22, %v606_v18  ;;  %v620_v29 = vadd.f32 %v619_v23, %v618_v21 }
 0x22b   : > { %v1122_v30 = vpop.eup %1121  ;;  %665 = vperm.xlu1 %1094, %v1118_v19   ;;  %v601_v31 = vadd.f32 %v600_v25, %v599_v20  ;;  %v613_v32 = vadd.f32 %v612_v26, %v611_v24  ;;  %v632_v33 = vsel %vm516_vm2, %v1120_v27, 0.0 }
 0x22c   : > { %675 = vperm.xlu0 %1093, %v1122_v30   ;;  %v609_v34 = vrot.slane %v608_v28, 1  ;;  %v621_v35 = vrot.slane %v620_v29, 2  ;;  %v633_v36 = vrot.slane %v632_v33, 4  ;;  %v625_v37 = vsel %vm516_vm2, %v1122_v30, 0.0 }
 0x22d   : > { %v602_v38 = vrot.slane %v601_v31, 1  ;;  %v614_v39 = vrot.slane %v613_v32, 2  ;;  %v626_v40 = vrot.slane %v625_v37, 4 }
 0x22e   : > { %v1124_v41 = vpop.eup %1123  ;;  %v610_v42 = vadd.f32 %v609_v34, %v608_v28  ;;  %v622_v44 = vadd.f32 %v621_v35, %v620_v29  ;;  %v634_v43 = vadd.f32 %v633_v36, %v632_v33 }
 0x22f   : > { %680 = vperm.xlu1 %1094, %v1120_v27   ;;  %v603_v46 = vadd.f32 %v602_v38, %v601_v31  ;;  %v615_v47 = vadd.f32 %v614_v39, %v613_v32  ;;  %v627_v45 = vadd.f32 %v626_v40, %v625_v37  ;;  %v646_v48 = vsel %vm516_vm2, %v1124_v41, 0.0 }
 0x230   : > { %1127 = vrcp.f32 %v610_v42  ;;  %v623_v49 = vrot.slane %v622_v44, 1  ;;  %v635_v51 = vrot.slane %v634_v43, 2  ;;  %v647_v52 = vrot.slane %v646_v48, 4 }
 0x231   : > { %v1126_v54 = vpop.eup %1125  ;;  %1129 = vrcp.f32 %v603_v46  ;;  %v616_v55 = vrot.slane %v615_v47, 1  ;;  %v628_v56 = vrot.slane %v627_v45, 2 }
 0x232   : > { %v639_v57 = vsel %vm516_vm2, %v1126_v54, 0.0  ;;  %685 = vperm.xlu0 %1093, %v1126_v54   ;;  %v624_v58 = vadd.f32 %v623_v49, %v622_v44  ;;  %v636_v59 = vadd.f32 %v635_v51, %v634_v43  ;;  %v648_v60 = vadd.f32 %v647_v52, %v646_v48 }
 0x233   : > { %v640_v50 = vrot.slane %v639_v57, 4  ;;  %690 = vperm.xlu1 %1094, %v1124_v41   ;;  %v617_v62 = vadd.f32 %v616_v55, %v615_v47  ;;  %v629_v63 = vadd.f32 %v628_v56, %v627_v45 }
 0x234   : > { %1131 = vrcp.f32 %v624_v58  ;;  %v637_v53 = vrot.slane %v636_v59, 1  ;;  %v649_v0 = vrot.slane %v648_v60, 2 }
 0x235   : > { %1133 = vrcp.f32 %v617_v62  ;;  %v630_v2 = vrot.slane %v629_v63, 1  ;;  %v641_v3 = vadd.f32 %v640_v50, %v639_v57 }
 0x236   : > { %v638_v4 = vadd.f32 %v637_v53, %v636_v59  ;;  %v650_v6 = vadd.f32 %v649_v0, %v648_v60 }
 0x237   : > { %v631_v14 = vadd.f32 %v630_v2, %v629_v63  ;;  %v642_v61 = vrot.slane %v641_v3, 2 }
 0x238   : > { %1135 = vrcp.f32 %v638_v4  ;;  %v651_v1 = vrot.slane %v650_v6, 1 }
 0x239   : > { %1137 = vrcp.f32 %v631_v14  ;;  %v643_v15 = vadd.f32 %v642_v61, %v641_v3 }
 0x23a   : > { %v1128_v16 = vpop.eup %1127  ;;  %v652_v17 = vadd.f32 %v651_v1, %v650_v6 }
 0x23b   : > { %v1130_v18 = vpop.eup %1129  ;;  %v766_v19 = vmul.f32 %v1128_v16, %v610_v42  ;;  %v644_v20 = vrot.slane %v643_v15, 1 }
 0x23c   : > { %v765_v21 = vmul.f32 %v1130_v18, %v603_v46  ;;  %1139 = vrcp.f32 %v652_v17 }
 0x23d   : > { %v774_v22 = vsub.f32 2.0, %v766_v19  ;;  %v645_v23 = vadd.f32 %v644_v20, %v643_v15 }
 0x23e   : > { %v1132_v24 = vpop.eup %1131  ;;  %v773_v25 = vsub.f32 2.0, %v765_v21 }
 0x23f   : > { %v1134_v26 = vpop.eup %1133  ;;  %v782_v27 = vmul.f32 %v1128_v16, %v774_v22  ;;  %v768_v28 = vmul.f32 %v1132_v24, %v624_v58  ;;  %1141 = vrcp.f32 %v645_v23 }
 0x240   : > { %v781_v29 = vmul.f32 %v1130_v18, %v773_v25  ;;  %v767_v30 = vmul.f32 %v1134_v26, %v617_v62 }
 0x241   : > { %796 = vperm.xlu1 %1094, %v782_v27   ;;  %v776_v31 = vsub.f32 2.0, %v768_v28 }
 0x242   : > { %v1136_v32 = vpop.eup %1135  ;;  %791 = vperm.xlu0 %1093, %v781_v29   ;;  %v775_v33 = vsub.f32 2.0, %v767_v30 }
 0x243   : > { %v1138_v34 = vpop.eup %1137  ;;  %v784_v35 = vmul.f32 %v1132_v24, %v776_v31  ;;  %v770_v36 = vmul.f32 %v1136_v32, %v638_v4 }
 0x244   : > { %v783_v37 = vmul.f32 %v1134_v26, %v775_v33  ;;  %v769_v38 = vmul.f32 %v1138_v34, %v631_v14 }
 0x245   : > { %806 = vperm.xlu1 %1094, %v784_v35   ;;  %v778_v39 = vsub.f32 2.0, %v770_v36 }
 0x246   : > { %v1140_v40 = vpop.eup %1139  ;;  %801 = vperm.xlu0 %1093, %v783_v37   ;;  %v777_v41 = vsub.f32 2.0, %v769_v38 }
 0x247   : > { %v786_v42 = vmul.f32 %v1136_v32, %v778_v39  ;;  %v772_v44 = vmul.f32 %v1140_v40, %v652_v17 }
 0x248   : > { %v785_v43 = vmul.f32 %v1138_v34, %v777_v41 }
 0x249   : > { %v1142_v46 = vpop.eup %1141  ;;  %816 = vperm.xlu1 %1094, %v786_v42   ;;  %v780_v47 = vsub.f32 2.0, %v772_v44 }
 0x24a   : > { %811 = vperm.xlu0 %1093, %v785_v43   ;;  %v771_v45 = vmul.f32 %v1142_v46, %v645_v23 }
 0x24b   : > { %v788_v48 = vmul.f32 %v1140_v40, %v780_v47 }
 0x24c   : > { %v779_v49 = vsub.f32 2.0, %v771_v45 }
 0x24d   : > { %826 = vperm.xlu1 %1094, %v788_v48  }
 0x24e   : > { %v787_v51 = vmul.f32 %v1142_v46, %v779_v49 }
 0x250   : > { %821 = vperm.xlu0 %1093, %v787_v51  }
 0x2a2   : > { %v661_v52 = vpop.permute.xlu0 %660 }
 0x2a3   : > { %v694_v56 = vmul.f32 %v661_v52, %v1391_v7 }
 0x2a5   : > { %v708_v50 = vsel %vm246_vm0, %v694_v56, 0.0 }
 0x2a6   : > { %v656_v54 = vpop.permute.xlu0 %655  ;;  %v671_v55 = vpop.permute.xlu1 %670  ;;  %v709_v3 = vrot.slane %v708_v50, 4 }
 0x2a7   : > { %v693_v57 = vmul.f32 %v656_v54, %v1387_v5  ;;  %v696_v0 = vmul.f32 %v671_v55, %v1399_v9 }
 0x2a8   : > { %v710_v1 = vadd.f32 %v709_v3, %v708_v50 }
 0x2a9   : > { %v701_v62 = vsel %vm246_vm0, %v693_v57, 0.0 }
 0x2aa   : > { %v666_v58 = vpop.permute.xlu1 %665  ;;  %v702_v4 = vrot.slane %v701_v62, 4  ;;  %v711_v20 = vrot.slane %v710_v1, 2 }
 0x2ab   : > { %v695_v59 = vmul.f32 %v666_v58, %v1393_v8  ;;  %v676_v60 = vpop.permute.xlu0 %675  ;;  %v722_v8 = vsel %vm246_vm0, %v696_v0, 0.0 }
 0x2ac   : > { %v697_v53 = vmul.f32 %v676_v60, %v1401_v10  ;;  %v703_v15 = vadd.f32 %v702_v4, %v701_v62  ;;  %v723_v18 = vrot.slane %v722_v8, 4 }
 0x2ad   : > { %v715_v63 = vsel %vm246_vm0, %v695_v59, 0.0 }
 0x2ae   : > { %v681_v2 = vpop.permute.xlu1 %680  ;;  %v716_v7 = vrot.slane %v715_v63, 4  ;;  %v729_v5 = vsel %vm246_vm0, %v697_v53, 0.0  ;;  %v704_v21 = vrot.slane %v703_v15, 2  ;;  %v724_v25 = vadd.f32 %v723_v18, %v722_v8 }
 0x2af   : > { %v698_v14 = vmul.f32 %v681_v2, %v1407_v11  ;;  %v730_v10 = vrot.slane %v729_v5, 4 }
 0x2b0   : > { %v717_v17 = vadd.f32 %v716_v7, %v715_v63  ;;  %v705_v29 = vadd.f32 %v704_v21, %v703_v15 }
 0x2b1   : > { %v686_v6 = vpop.permute.xlu0 %685  ;;  %v736_v19 = vsel %vm246_vm0, %v698_v14, 0.0  ;;  %v731_v24 = vadd.f32 %v730_v10, %v729_v5 }
 0x2b2   : > { %v691_v61 = vpop.permute.xlu1 %690  ;;  %v699_v16 = vmul.f32 %v686_v6, %v1409_v12  ;;  %v718_v23 = vrot.slane %v717_v17, 2  ;;  %v737_v26 = vrot.slane %v736_v19, 4  ;;  %v712_v12 = vadd.f32 %v711_v20, %v710_v1 }
 0x2b3   : > { %v700_v9 = vmul.f32 %v691_v61, %v1415_v13  ;;  %v732_v30 = vrot.slane %v731_v24, 2  ;;  %v725_v13 = vrot.slane %v724_v25, 2  ;;  %v706_v36 = vrot.slane %v705_v29, 1 }
 0x2b4   : > { %v743_v22 = vsel %vm246_vm0, %v699_v16, 0.0  ;;  %v719_v31 = vadd.f32 %v718_v23, %v717_v17  ;;  %v738_v32 = vadd.f32 %v737_v26, %v736_v19  ;;  %v713_v35 = vrot.slane %v712_v12, 1 }
 0x2b5   : > { %v750_v11 = vsel %vm246_vm0, %v700_v9, 0.0  ;;  %v744_v27 = vrot.slane %v743_v22, 4  ;;  %v733_v39 = vadd.f32 %v732_v30, %v731_v24  ;;  %v726_v42 = vadd.f32 %v725_v13, %v724_v25 }
 0x2b6   : > { %v751_v28 = vrot.slane %v750_v11, 4  ;;  %v720_v38 = vrot.slane %v719_v31, 1  ;;  %v739_v40 = vrot.slane %v738_v32, 2  ;;  %v714_v46 = vadd.f32 %v713_v35, %v712_v12 }
 0x2b7   : > { %v745_v33 = vadd.f32 %v744_v27, %v743_v22  ;;  %v707_v47 = vadd.f32 %v706_v36, %v705_v29  ;;  %v734_v49 = vrot.slane %v733_v39, 1  ;;  %v727_v54 = vrot.slane %v726_v42, 1 }
 0x2b8   : > { %v752_v34 = vadd.f32 %v751_v28, %v750_v11  ;;  %v721_v48 = vadd.f32 %v720_v38, %v719_v31  ;;  %v740_v56 = vadd.f32 %v739_v40, %v738_v32 }
 0x2b9   : > { %v746_v44 = vrot.slane %v745_v33, 2  ;;  %v735_v50 = vadd.f32 %v734_v49, %v733_v39  ;;  %v728_v63 = vadd.f32 %v727_v54, %v726_v42 }
 0x2ba   : > { %v753_v43 = vrot.slane %v752_v34, 2  ;;  %v741_v53 = vrot.slane %v740_v56, 1 }
 0x2bb   : > { %v747_v58 = vadd.f32 %v746_v44, %v745_v33 }
 0x2bc   : > { %v754_v59 = vadd.f32 %v753_v43, %v752_v34  ;;  %v742_v6 = vadd.f32 %v741_v53, %v740_v56 }
 0x2bd   : > { %v748_v4 = vrot.slane %v747_v58, 1 }
 0x2be   : > { %v755_v5 = vrot.slane %v754_v59, 1 }
 0x2bf   : > { %v749_v1 = vadd.f32 %v748_v4, %v747_v58 }
 0x2c0   : > { %v797_v37 = vpop.permute.xlu1 %796  ;;  %v756_v16 = vadd.f32 %v755_v5, %v754_v59 }
 0x2c1   : > { %v792_v41 = vpop.permute.xlu0 %791  ;;  %v830_v51 = vmul.f32 %v797_v37, %v714_v46 }
 0x2c2   : > { %v829_v52 = vmul.f32 %v792_v41, %v707_v47 }
 0x2c4   : > { %v807_v45 = vpop.permute.xlu1 %806  ;;  %v846_v62 = vsel %vm845_vm3, %v830_v51, %v829_v52 }
 0x2c5   : > { %v802_v55 = vpop.permute.xlu0 %801  ;;  %v832_v7 = vmul.f32 %v807_v45, %v728_v63 }
 0x2c6   : > { %v831_v57 = vmul.f32 %v802_v55, %v721_v48 }
 0x2c8   : > { %v817_v60 = vpop.permute.xlu1 %816  ;;  %v848_v2 = vsel %vm847_vm4, %v831_v57, %v846_v62 }
 0x2c9   : > { %v812_v0 = vpop.permute.xlu0 %811  ;;  %v850_v8 = vsel %vm849_vm5, %v832_v7, %v848_v2  ;;  %v834_v15 = vmul.f32 %v817_v60, %v742_v6 }
 0x2ca   : > { %v833_v3 = vmul.f32 %v812_v0, %v735_v50 }
 0x2cc   : > { %v852_v14 = vsel %vm851_vm6, %v833_v3, %v850_v8  ;;  %v827_v61 = vpop.permute.xlu1 %826 }
 0x2cd   : > { %v836_v9 = vmul.f32 %v827_v61, %v756_v16  ;;  %v854_v18 = vsel %vm853_vm7, %v834_v15, %v852_v14 }
 0x2cf   : > { %v822_v17 = vpop.permute.xlu0 %821 }
 0x2d0   : > { %v835_v10 = vmul.f32 %v822_v17, %v749_v1 }
 0x2d2   : > { %v856_v19 = vsel %vm855_vm8, %v835_v10, %v854_v18 }
 0x2d3   : > { %v858_v20 = vsel %vm857_vm9, %v836_v9, %v856_v19 }
 0x2d4   : > { %860 = vst.msk [vmem:[%s221_s6] sm:$0xff] %vm246_vm0, %v858_v20 }
 0x2d5   : > { %1184 = shalt.err (!%p1181_p1)
}
 0x2d6   : > { %s1185_s20 = scalar_lea.hbm %s1473_s29, 128  ;;  %s1189_s11 = scalar_lea.hbm %s1521_s4, 384 }
 0x2d7   : > { %p1186_p3 = scmp.ne.s32.totalorder %s1473_s29, %s1185_s20  ;;  %p1190_p2 = scmp.lt.u32.totalorder %s1473_s29, %s1521_s4 }
 0x2d8   : > { %p1191_p7 = scmp.lt.u32.totalorder %s1189_s11, %s1185_s20  ;;  %p1193_p6 = scmp.lt.u32.totalorder %s1185_s20, %s1473_s29 }
 0x2d9   : > { %p1187_p4 = pnand %p1186_p3, %p1313_p9 }
 0x2da   : > { %p1192_p8 = por %p1191_p7, %p1190_p2 }
 0x2db   : > { %p1188_p5 = pneg %p1187_p4 }
 0x2dc   : > { %p1194_p10 = por %p1193_p6, %p1192_p8 }
 0x2de   : > { %p1195_p13 = pnand %p1194_p10, %p1188_p5 }
 0x2e0   : > { %1198 = shalt.err (!%p1195_p13)
}
 0x2e1   : > { %1051 = dma.vmem_to_hbm [thread:$0]  (%p1313_p9), %s1475_s8, 128, %s1473_s29, %s862_s19  }
 0x2e2 PF: > { %p1057_p11 = scmp.ge.s32.totalorder %s1237_s18, 2  ;;  %s887_s23 = sand.u32 1, %s1225_s15  }
 0x2e3   : > { %p1525_p12 = scmp.ne.s32.totalorder %s1524_s27, 0  ;;  %s888_s28 = scalar_lea.sflag [#allocation4], %s887_s23 }
 0x2e5   : > { %p1054_p0 = pnand %p1057_p11, %p1525_p12 }
 0x2e7   : > { %1220 = dma.done.wait (!%p1054_p0), %s888_s28, 128  }
 0x2e8   : > { %1222 = vsyncadd (!%p1054_p0), %s888_s28, 4294967168  ;;  %p17_p1 = scmp.ge.s32.totalorder %s1294_s21, 5   ;;  %s1526_s15 = smov %s1229_s16 }
 0x2e9   : > { %s1527_s16 = smov %s1233_s17  ;;  %s1528_s17 = smov %s1306_s24 }
 0x2ea   : > { %s1529_s18 = smov %s1294_s21  ;;  %19 = sbr.rel (!%p17_p1) target bundleno = 5 (0x5), region = 81 }
 0x2f1   :  { %893 = vsyncpa [#allocation3], 1 }
 0x2f2   :  { %895 = vsyncpa [#allocation3 + $0x1], 1 }
 0x2f3   :  { %896 = vsyncpa [#allocation4], 1 }
 0x2f4   :  { %898 = vsyncpa [#allocation4 + $0x1], 1 }

</bundles_post_ra>
